<compile_context>
chip_gen: v5e
topology: v5e:2x2
jax: 0.10.0
libtpu: 0.0.40
codegen_flags: <defaults>
</compile_context>

<pallas_src>
import functools

import jax
import jax.numpy as jnp
from jax.experimental import pallas as pl
from jax.experimental.pallas import tpu as pltpu


def _round_up(x, m):
    return ((x + m - 1) // m) * m


def _actor_critic_kernel(
    state_ref,   # (TB, S)        f32
    w1_ref,      # (S, 2H)        fused [wa1 | wc1]          (f32 or bf16)
    b1_ref,      # (1, 2H)        fused [ba1 | bc1]          f32
    w2_ref,      # (2H, A+1)      block-diag [[wa2,0],[0,wc2]] (f32 or bf16)
    b2_ref,      # (1, A+1)       fused [ba2 | bc2]          f32
    out_ref,     # (TB, 2A+2)     packed probs|logp|entropy|value
    *,
    action_dim: int,
):
    A = action_dim
    x = state_ref[...]

    # ---- fused layer 1: one MXU op produces actor + critic hidden ----
    h = jnp.dot(x.astype(w1_ref.dtype), w1_ref[...],
                preferred_element_type=jnp.float32) + b1_ref[...]
    h = jnp.maximum(h, 0.0)

    # ---- fused layer 2 (block-diagonal): logits in lanes [0, A), value in lane A ----
    z = jnp.dot(h.astype(w2_ref.dtype), w2_ref[...],
                preferred_element_type=jnp.float32) + b2_ref[...]
    logits = z[:, :A]
    value = z[:, A:A + 1]

    # numerically-stable softmax / log-softmax along the action (lane) axis
    m = jnp.max(logits, axis=-1, keepdims=True)
    shifted = logits - m
    e = jnp.exp(shifted)
    s = jnp.sum(e, axis=-1, keepdims=True)
    log_probs = shifted - jnp.log(s)
    probs = jnp.exp(log_probs)                      # no divide: EUP exp instead
    entropy = -jnp.sum(probs * log_probs, axis=-1, keepdims=True)

    # ---- packed, single-buffer output: probs | log_probs | entropy | value ----
    out_ref[:, 0:A] = probs
    out_ref[:, A:2 * A] = log_probs
    out_ref[:, 2 * A:2 * A + 1] = entropy
    out_ref[:, 2 * A + 1:2 * A + 2] = value


@functools.partial(jax.jit, static_argnames=("tb",))
def actor_critic_forward(state, packed, tb=1024):
    """Runs the fused actor+critic Pallas kernel.

    `packed` comes from pack_params(). Returns
    (action_probs, action_log_probs, entropy, state_values)."""
    B, S = state.shape
    H2 = packed["w1"].shape[1]          # 2 * hidden_dim
    A = packed["w2"].shape[1] - 1       # action_dim
    OUT_W = 2 * A + 2

    # Batch tile: multiple of 8 sublanes, capped so v7x's 64 MiB VMEM is safe.
    TB = min(tb, _round_up(B, 8))
    B_pad = _round_up(B, TB)
    if B_pad != B:
        state = jnp.pad(state, ((0, B_pad - B), (0, 0)))
    grid = (B_pad // TB,)

    w_bytes = (packed["w1"].size * packed["w1"].dtype.itemsize
               + packed["w2"].size * packed["w2"].dtype.itemsize
               + packed["b1"].size * 4 + packed["b2"].size * 4)
    cost = pl.CostEstimate(
        flops=2 * B_pad * (S * H2 + H2 * (A + 1)),
        transcendentals=B_pad * (2 * A + 1),            # two exps + one log per row
        bytes_accessed=B_pad * S * 4 + w_bytes + B_pad * OUT_W * 4,
    )

    out = pl.pallas_call(
        functools.partial(_actor_critic_kernel, action_dim=A),
        out_shape=jax.ShapeDtypeStruct((B_pad, OUT_W), jnp.float32),
        grid=grid,
        in_specs=[
            pl.BlockSpec((TB, S), lambda i: (i, 0)),        # state: tiled over batch
            pl.BlockSpec((S, H2), lambda i: (0, 0)),        # weights stay resident
            pl.BlockSpec((1, H2), lambda i: (0, 0)),
            pl.BlockSpec((H2, A + 1), lambda i: (0, 0)),
            pl.BlockSpec((1, A + 1), lambda i: (0, 0)),
        ],
        out_specs=pl.BlockSpec((TB, OUT_W), lambda i: (i, 0)),
        compiler_params=pltpu.CompilerParams(
            dimension_semantics=("parallel",),              # shard batch across TCs (v7x)
            vmem_limit_bytes=32 * 1024 * 1024,
        ),
        cost_estimate=cost,
    )(state, packed["w1"], packed["b1"], packed["w2"], packed["b2"])

    probs = out[:B, 0:A]
    log_probs = out[:B, A:2 * A]
    entropy = out[:B, 2 * A:2 * A + 1]
    values = out[:B, 2 * A + 1:2 * A + 2]
    return probs, log_probs, entropy, values


def init_params(key, state_dim, action_dim, hidden_dim=64):
    """Deterministic init mimicking torch.nn.Linear (uniform(-1/sqrt(fan_in), +)).

    Weights stored as (in, out); biases as (1, out)."""
    ks = jax.random.split(key, 8)

    def lin(kw, kb, fan_in, fan_out):
        bound = 1.0 / jnp.sqrt(jnp.float32(fan_in))
        w = jax.random.uniform(kw, (fan_in, fan_out), jnp.float32, -bound, bound)
        b = jax.random.uniform(kb, (1, fan_out), jnp.float32, -bound, bound)
        return w, b

    wa1, ba1 = lin(ks[0], ks[1], state_dim, hidden_dim)
    wa2, ba2 = lin(ks[2], ks[3], hidden_dim, action_dim)
    wc1, bc1 = lin(ks[4], ks[5], state_dim, hidden_dim)
    wc2, bc2 = lin(ks[6], ks[7], hidden_dim, 1)
    return dict(wa1=wa1, ba1=ba1, wa2=wa2, ba2=ba2,
                wc1=wc1, bc1=bc1, wc2=wc2, bc2=bc2)


def pack_params(params, compute_dtype=jnp.float32):
    """Fuse actor/critic weights for the kernel.

    w1 = [wa1 | wc1]               (S, 2H)
    w2 = [[wa2, 0], [0, wc2]]      (2H, A+1)   block-diagonal
    Biases stay f32; weights cast to `compute_dtype` (bf16 recommended on v6e/v7x)."""
    H = params["wa1"].shape[1]
    A = params["wa2"].shape[1]
    w1 = jnp.concatenate([params["wa1"], params["wc1"]], axis=1)
    b1 = jnp.concatenate([params["ba1"], params["bc1"]], axis=1)
    w2 = jnp.zeros((2 * H, A + 1), jnp.float32)
    w2 = w2.at[:H, :A].set(params["wa2"])
    w2 = w2.at[H:, A:].set(params["wc2"])
    b2 = jnp.concatenate([params["ba2"], params["bc2"]], axis=1)
    return dict(
        w1=w1.astype(compute_dtype),
        b1=b1.astype(jnp.float32),
        w2=w2.astype(compute_dtype),
        b2=b2.astype(jnp.float32),
    )


# ----- glue that reproduces ActorCritic.act / ActorCritic.evaluate semantics -----

def act(key, state, packed):
    _, log_probs, _, _ = actor_critic_forward(state, packed)
    action = jax.random.categorical(key, log_probs, axis=-1)                  # Categorical.sample()
    logp = jnp.take_along_axis(log_probs, action[:, None], axis=-1)[:, 0]     # dist.log_prob(action)
    return action, logp


def evaluate(state, action, packed):
    _, log_probs, entropy, values = actor_critic_forward(state, packed)
    action_logprobs = jnp.take_along_axis(log_probs, action[:, None], axis=-1)[:, 0]
    dist_entropy = entropy[:, 0]
    return action_logprobs, dist_entropy, values   # values shape (B, 1), like critic output


def _reference_forward(state, p):
    h_a = jax.nn.relu(state @ p["wa1"] + p["ba1"])
    logits = h_a @ p["wa2"] + p["ba2"]
    probs = jax.nn.softmax(logits, axis=-1)
    logp = jax.nn.log_softmax(logits, axis=-1)
    ent = -jnp.sum(probs * logp, axis=-1, keepdims=True)
    h_c = jax.nn.relu(state @ p["wc1"] + p["bc1"])
    val = h_c @ p["wc2"] + p["bc2"]
    return probs, logp, ent, val


if __name__ == "__main__":
    key = jax.random.PRNGKey(0)
    k_param, k_state, k_act = jax.random.split(key, 3)

    batch, state_dim, action_dim, hidden_dim = 8, 16, 6, 64
    params = init_params(k_param, state_dim, action_dim, hidden_dim)
    state = jax.random.normal(k_state, (batch, state_dim), dtype=jnp.float32)
    r_probs, r_logp, r_ent, r_val = _reference_forward(state, params)

    # ---- f32 path: tight correctness check ----
    packed_f32 = pack_params(params, jnp.float32)
    probs, log_probs, entropy, values = actor_critic_forward(state, packed_f32)
    jax.block_until_ready((probs, log_probs, entropy, values))
    assert jnp.allclose(probs, r_probs, atol=1e-5), "probs mismatch (f32)"
    assert jnp.allclose(log_probs, r_logp, atol=1e-5), "log-probs mismatch (f32)"
    assert jnp.allclose(entropy, r_ent, atol=1e-5), "entropy mismatch (f32)"
    assert jnp.allclose(values, r_val, atol=1e-5), "values mismatch (f32)"

    # ---- bf16-operand path (MXU-native on v6e/v7x): loose tolerance ----
    packed_bf16 = pack_params(params, jnp.bfloat16)
    b_probs, b_logp, b_ent, b_val = actor_critic_forward(state, packed_bf16)
    jax.block_until_ready((b_probs, b_logp, b_ent, b_val))
    assert jnp.allclose(b_probs, r_probs, atol=5e-2), "probs mismatch (bf16)"
    assert jnp.allclose(b_logp, r_logp, atol=5e-2), "log-probs mismatch (bf16)"
    assert jnp.allclose(b_ent, r_ent, atol=5e-2), "entropy mismatch (bf16)"
    assert jnp.allclose(b_val, r_val, atol=5e-2), "values mismatch (bf16)"

    # ---- act / evaluate glue (Categorical sampling + log_prob gather in JAX) ----
    action, act_logp = act(k_act, state, packed_f32)
    eval_logp, eval_ent, eval_vals = evaluate(state, action, packed_f32)
    jax.block_until_ready((action, act_logp, eval_logp, eval_ent, eval_vals))
    assert jnp.allclose(act_logp, eval_logp, atol=1e-5)
    assert jnp.allclose(eval_vals, r_val, atol=1e-5)

    print("KERNEL_OK")
</pallas_src>

<mosaic_0001>
module attributes {stable_mosaic.version = 11 : i64} {
  func.func @_actor_critic_kernel(%arg0: i32, %arg1: memref<8x16xf32, #tpu.memory_space<vmem>>, %arg2: memref<16x128xf32, #tpu.memory_space<vmem>>, %arg3: memref<1x128xf32, #tpu.memory_space<vmem>>, %arg4: memref<128x7xf32, #tpu.memory_space<vmem>>, %arg5: memref<1x7xf32, #tpu.memory_space<vmem>>, %arg6: memref<8x14xf32, #tpu.memory_space<vmem>>) attributes {dimension_semantics = [#tpu.dimension_semantics<parallel>], iteration_bounds = array<i64: 1>, scalar_prefetch = 0 : i64, scratch_operands = 0 : i64, tpu.core_type = #tpu.core_type<tc>, window_params = [{transform_indices = @transform_0, window_bounds = array<i64: 8, 16>}, {pipeline_mode = #tpu.pipeline_mode<synchronous>, transform_indices = @transform_1, window_bounds = array<i64: 16, 128>}, {pipeline_mode = #tpu.pipeline_mode<synchronous>, transform_indices = @transform_2, window_bounds = array<i64: 1, 128>}, {pipeline_mode = #tpu.pipeline_mode<synchronous>, transform_indices = @transform_3, window_bounds = array<i64: 128, 7>}, {pipeline_mode = #tpu.pipeline_mode<synchronous>, transform_indices = @transform_4, window_bounds = array<i64: 1, 7>}, {transform_indices = @transform_5, window_bounds = array<i64: 8, 14>}]} {
    %c0 = arith.constant 0 : index
    %c0_0 = arith.constant 0 : index
    %0 = vector.load %arg1[%c0, %c0_0] : memref<8x16xf32, #tpu.memory_space<vmem>>, vector<8x16xf32>
    %c0_1 = arith.constant 0 : index
    %c0_2 = arith.constant 0 : index
    %1 = vector.load %arg2[%c0_1, %c0_2] : memref<16x128xf32, #tpu.memory_space<vmem>>, vector<16x128xf32>
    %cst = arith.constant dense<0.000000e+00> : vector<8x128xf32>
    %2 = tpu.matmul %0, %1, %cst {dimension_numbers = #tpu.dot_dimension_numbers<[1], [0], [0], [1], [0, 0, 1, 1], [], []>} : vector<8x16xf32>, vector<16x128xf32>, vector<8x128xf32> -> vector<8x128xf32>
    %c0_3 = arith.constant 0 : index
    %c0_4 = arith.constant 0 : index
    %3 = vector.load %arg3[%c0_3, %c0_4] : memref<1x128xf32, #tpu.memory_space<vmem>>, vector<1x128xf32>
    %4 = vector.broadcast %3 : vector<1x128xf32> to vector<8x128xf32>
    %5 = arith.addf %2, %4 : vector<8x128xf32>
    %cst_5 = arith.constant 0.000000e+00 : f32
    %6 = vector.broadcast %cst_5 : f32 to vector<8x128xf32>
    %7 = arith.maximumf %5, %6 : vector<8x128xf32>
    %c0_6 = arith.constant 0 : index
    %c0_7 = arith.constant 0 : index
    %8 = vector.load %arg4[%c0_6, %c0_7] : memref<128x7xf32, #tpu.memory_space<vmem>>, vector<128x7xf32>
    %cst_8 = arith.constant dense<0.000000e+00> : vector<8x7xf32>
    %9 = tpu.matmul %7, %8, %cst_8 {dimension_numbers = #tpu.dot_dimension_numbers<[1], [0], [0], [1], [0, 0, 1, 1], [], []>} : vector<8x128xf32>, vector<128x7xf32>, vector<8x7xf32> -> vector<8x7xf32>
    %c0_9 = arith.constant 0 : index
    %c0_10 = arith.constant 0 : index
    %10 = vector.load %arg5[%c0_9, %c0_10] : memref<1x7xf32, #tpu.memory_space<vmem>>, vector<1x7xf32>
    %11 = vector.broadcast %10 : vector<1x7xf32> to vector<8x7xf32>
    %12 = arith.addf %9, %11 : vector<8x7xf32>
    %13 = vector.extract_strided_slice %12 {offsets = [0, 0], sizes = [8, 6], strides = [1, 1]} : vector<8x7xf32> to vector<8x6xf32>
    %14 = vector.extract_strided_slice %12 {offsets = [0, 6], sizes = [8, 1], strides = [1, 1]} : vector<8x7xf32> to vector<8x1xf32>
    %cst_11 = arith.constant dense<0xFF800000> : vector<8xf32>
    %15 = vector.multi_reduction <maximumf>, %13, %cst_11 [1] : vector<8x6xf32> to vector<8xf32>
    %16 = vector.shape_cast %15 : vector<8xf32> to vector<8x1xf32>
    %17 = vector.broadcast %16 : vector<8x1xf32> to vector<8x6xf32>
    %18 = arith.subf %13, %17 : vector<8x6xf32>
    %19 = math.exp %18 : vector<8x6xf32>
    %cst_12 = arith.constant dense<0.000000e+00> : vector<8xf32>
    %20 = vector.multi_reduction <add>, %19, %cst_12 [1] : vector<8x6xf32> to vector<8xf32>
    %21 = vector.shape_cast %20 : vector<8xf32> to vector<8x1xf32>
    %22 = math.log %21 : vector<8x1xf32>
    %23 = vector.broadcast %22 : vector<8x1xf32> to vector<8x6xf32>
    %24 = arith.subf %18, %23 : vector<8x6xf32>
    %25 = math.exp %24 : vector<8x6xf32>
    %26 = arith.mulf %25, %24 : vector<8x6xf32>
    %cst_13 = arith.constant dense<0.000000e+00> : vector<8xf32>
    %27 = vector.multi_reduction <add>, %26, %cst_13 [1] : vector<8x6xf32> to vector<8xf32>
    %28 = vector.shape_cast %27 : vector<8xf32> to vector<8x1xf32>
    %cst_14 = arith.constant 0.000000e+00 : f32
    %29 = vector.broadcast %cst_14 : f32 to vector<8x1xf32>
    %30 = arith.subf %29, %28 : vector<8x1xf32>
    %c0_15 = arith.constant 0 : index
    %c0_16 = arith.constant 0 : index
    %31 = vector.load %arg6[%c0_15, %c0_16] : memref<8x14xf32, #tpu.memory_space<vmem>>, vector<8x6xf32>
    tpu.vector_store %arg6[%c0_15, %c0_16], %25 {strides = array<i32>} : memref<8x14xf32, #tpu.memory_space<vmem>>, vector<8x6xf32>,
    %c0_17 = arith.constant 0 : index
    %c6 = arith.constant 6 : index
    %32 = vector.load %arg6[%c0_17, %c6] : memref<8x14xf32, #tpu.memory_space<vmem>>, vector<8x6xf32>
    tpu.vector_store %arg6[%c0_17, %c6], %24 {strides = array<i32>} : memref<8x14xf32, #tpu.memory_space<vmem>>, vector<8x6xf32>,
    %c0_18 = arith.constant 0 : index
    %c12 = arith.constant 12 : index
    %33 = vector.load %arg6[%c0_18, %c12] : memref<8x14xf32, #tpu.memory_space<vmem>>, vector<8x1xf32>
    tpu.vector_store %arg6[%c0_18, %c12], %30 {strides = array<i32>} : memref<8x14xf32, #tpu.memory_space<vmem>>, vector<8x1xf32>,
    %c0_19 = arith.constant 0 : index
    %c13 = arith.constant 13 : index
    %34 = vector.load %arg6[%c0_19, %c13] : memref<8x14xf32, #tpu.memory_space<vmem>>, vector<8x1xf32>
    tpu.vector_store %arg6[%c0_19, %c13], %14 {strides = array<i32>} : memref<8x14xf32, #tpu.memory_space<vmem>>, vector<8x1xf32>,
    return
  }
  func.func @transform_0(%arg0: i32) -> (i32, i32) {
    %c0_i32 = arith.constant 0 : i32
    %c0_i32_0 = arith.constant 0 : i32
    return %arg0, %c0_i32 : i32, i32
  }
  func.func @transform_1(%arg0: i32) -> (i32, i32) {
    %c0_i32 = arith.constant 0 : i32
    %c0_i32_0 = arith.constant 0 : i32
    %c0_i32_1 = arith.constant 0 : i32
    return %c0_i32, %c0_i32_0 : i32, i32
  }
  func.func @transform_2(%arg0: i32) -> (i32, i32) {
    %c0_i32 = arith.constant 0 : i32
    %c0_i32_0 = arith.constant 0 : i32
    %c0_i32_1 = arith.constant 0 : i32
    return %c0_i32, %c0_i32_0 : i32, i32
  }
  func.func @transform_3(%arg0: i32) -> (i32, i32) {
    %c0_i32 = arith.constant 0 : i32
    %c0_i32_0 = arith.constant 0 : i32
    %c0_i32_1 = arith.constant 0 : i32
    return %c0_i32, %c0_i32_0 : i32, i32
  }
  func.func @transform_4(%arg0: i32) -> (i32, i32) {
    %c0_i32 = arith.constant 0 : i32
    %c0_i32_0 = arith.constant 0 : i32
    %c0_i32_1 = arith.constant 0 : i32
    return %c0_i32, %c0_i32_0 : i32, i32
  }
  func.func @transform_5(%arg0: i32) -> (i32, i32) {
    %c0_i32 = arith.constant 0 : i32
    %c0_i32_0 = arith.constant 0 : i32
    return %arg0, %c0_i32 : i32, i32
  }
}

</mosaic_0001>

<bundles_post_ra>
// kernel: actor_critic_forward.1
= control target key start
LH: loop header
LB: loop body
LE: loop exit
PB: predicated region body
PF: predicated region fallthrough
CT: control target
= control target key end

     0   :  { %vm27_vm0 = vcmask 130048   ;;  %vm92_vm1 = vcmask 48128   ;;  %s142_s6 = smov 7   ;;  %vm117_vm2 = vcmask 97328   ;;  %vm119_vm3 = vcmask 105568   ;;  %s253_s1 = inlined_call_operand.vmem [shape: f32[16,128], index: 1, kind: input, shape index: {}]   ;;  %s254_s0 = inlined_call_operand.vmem [shape: f32[8,16], index: 0, kind: input, shape index: {}]   ;;  %s255_s3 = inlined_call_operand.vmem [shape: f32[128,7], index: 3, kind: input, shape index: {}]   ;;  %s256_s2 = inlined_call_operand.vmem [shape: f32[1,128], index: 2, kind: input, shape index: {}]   ;;  %s257_s4 = inlined_call_operand.vmem [shape: f32[1,7], index: 4, kind: input, shape index: {}]   ;;  %s258_s5 = inlined_call_operand.vmem [shape: f32[8,14], index: 5, kind: output, shape index: {}]  }
   0x1   :  { %v22_v0 = vld [vmem:[%s253_s1 + $0x8] sm:$0xff]  ;;  %v21_v1 = vld [vmem:[%s253_s1] sm:$0xff]  ;;  %v67_v3 = vld [vmem:[%s255_s3 + $0x78] sm:$0xff]  ;;  %vm125_vm4 = vcmask 113768  }
   0x2   :  { %45 = vmatpush.msra.mxu0 %v22_v0  ;;  %v20_v2 = vld [vmem:[%s254_s0] sm:$0xff]  ;;  %v66_v4 = vld [vmem:[%s255_s3 + $0x70] sm:$0xff]  ;;  %72 = vmatpush.msra.mxu1 %v67_v3  ;;  %v65_v5 = vld [vmem:[%s255_s3 + $0x68] sm:$0xff] }
   0x3   :  { %v64_v6 = vld [vmem:[%s255_s3 + $0x60] sm:$0xff]  ;;  %v63_v7 = vld [vmem:[%s255_s3 + $0x58] sm:$0xff]  ;;  %v62_v8 = vld [vmem:[%s255_s3 + $0x50] sm:$0xff] }
   0x4   :  { %46 = vmatpush.msra.mxu0 %v21_v1  ;;  %73 = vmatpush.msra.mxu1 %v66_v4  ;;  %v61_v9 = vld [vmem:[%s255_s3 + $0x48] sm:$0xff]  ;;  %v60_v10 = vld [vmem:[%s255_s3 + $0x40] sm:$0xff]  ;;  %v59_v11 = vld [vmem:[%s255_s3 + $0x38] sm:$0xff] }
   0x5   :  { %131 = vmatmul.msk.f32.vlgmr.msra.gmra.mxu0 %vm27_vm0, %v20_v2  ;;  %v58_v12 = vld [vmem:[%s255_s3 + $0x30] sm:$0xff]  ;;  %v57_v13 = vld [vmem:[%s255_s3 + $0x28] sm:$0xff]  ;;  %v56_v14 = vld [vmem:[%s255_s3 + $0x20] sm:$0xff] }
   0x6   :  { %74 = vmatpush.msra.mxu1 %v65_v5  ;;  %v55_v15 = vld [vmem:[%s255_s3 + $0x18] sm:$0xff]  ;;  %v54_v16 = vld [vmem:[%s255_s3 + $0x10] sm:$0xff]  ;;  %v53_v17 = vld [vmem:[%s255_s3 + $0x8] sm:$0xff] }
   0x7   :  { %v52_v18 = vld [vmem:[%s255_s3] sm:$0xff] }
   0x8   :  { %75 = vmatpush.msra.mxu1 %v64_v6  ;;  %v134_v19 = vld [vmem:[%s256_s2] ss:$0 sm:$0xff] }
   0x9   :  { %v135_v23 = vld [vmem:[%s257_s4] ss:$0 sm:$0xff]  ;;  %s143_s4 = smov 6  }
   0xa   :  { %76 = vmatpush.msra.mxu1 %v63_v7 }
   0xc   :  { %77 = vmatpush.msra.mxu1 %v62_v8 }
   0xe   :  { %78 = vmatpush.msra.mxu1 %v61_v9 }
  0x10   :  { %79 = vmatpush.msra.mxu1 %v60_v10 }
  0x12   :  { %80 = vmatpush.msra.mxu1 %v59_v11 }
  0x14   :  { %81 = vmatpush.msra.mxu1 %v58_v12 }
  0x16   :  { %82 = vmatpush.msra.mxu1 %v57_v13 }
  0x18   :  { %83 = vmatpush.msra.mxu1 %v56_v14 }
  0x1a   :  { %84 = vmatpush.msra.mxu1 %v55_v15 }
  0x1c   :  { %85 = vmatpush.msra.mxu1 %v54_v16 }
  0x1e   :  { %86 = vmatpush.msra.mxu1 %v53_v17 }
  0x20   :  { %87 = vmatpush.msra.mxu1 %v52_v18 }
  0x82   :  { %v48_v20 = vpop.f32.mrf.mxu0 }
  0x83   :  { %v49_v21 = vadd.f32 %v134_v19, %v48_v20 }
  0x85   :  { %v51_v22 = vmax.f32 %v49_v21, 0.0 }
  0x87   :  { %88 = vmatmul.f32.vlgmr.msra.gmra.mxu1 %v51_v22 }
 0x104   :  { %v89_v24 = vpop.f32.mrf.mxu1 }
 0x105   :  { %v90_v25 = vadd.f32 %v135_v23, %v89_v24 }
 0x107   :  { %122 = vrot.lane.b32.xlu2 %v90_v25, %s142_s6  ;;  %v93_v26 = vsel %vm92_vm1, %v90_v25, -inf }
 0x108   :  { %94 = vmax.xlane.f32.xlu0 %v93_v26 }
 0x161   :  { %v123_v43 = vpop.permute.xlu2 %122 }
 0x17b   :  { %v95_v27 = vpop.xlane.xlu0 %94 }
 0x17c   :  { %v96_v28 = vsub.f32 %v90_v25, %v95_v27 }
 0x17e   :  { %v97_v29 = vmul.f32 1.442695, %v96_v28 }
 0x180   :  { %136 = vpow2.f32 %v97_v29 }
 0x186   :  { %v137_v30 = vpop.eup %136 }
 0x187   :  { %v99_v31 = vsel %vm92_vm1, %v137_v30, 0.0 }
 0x188   :  { %100 = vadd.xlane.f32.xlu0 %v99_v31 }
 0x1fb   :  { %v101_v32 = vpop.xlane.xlu0 %100 }
 0x1fc   :  { %138 = vlog2.f32 %v101_v32 }
 0x202   :  { %v139_v33 = vpop.eup %138 }
 0x203   :  { %v103_v34 = vmul.f32 0.6931472, %v139_v33 }
 0x205   :  { %v104_v35 = vsub.f32 %v96_v28, %v103_v34 }
 0x207   :  { %v105_v36 = vmul.f32 1.442695, %v104_v35 }
 0x209   :  { %140 = vpow2.f32 %v105_v36 }
 0x20f   :  { %v141_v37 = vpop.eup %140 }
 0x210   :  { %v107_v38 = vmul.f32 %v141_v37, %v104_v35  ;;  %112 = vst.msk [vmem:[%s258_s5] sm:$0xff] %vm92_vm1, %v141_v37 }
 0x212   :  { %v108_v39 = vsel %vm92_vm1, %v107_v38, 0.0 }
 0x213   :  { %109 = vadd.xlane.f32.xlu1 %v108_v39 }
 0x22c   :  { %114 = vrot.lane.b32.xlu1 %v104_v35, %s143_s4 }
 0x286   :  { %v110_v40 = vpop.xlane.xlu1 %109 }
 0x287   :  { %v111_v41 = vsub.f32 0.0, %v110_v40 }
 0x29e   :  { %v115_v42 = vpop.permute.xlu1 %114 }
 0x29f   :  { %118 = vst.msk [vmem:[%s258_s5] sm:$0xff] %vm117_vm2, %v115_v42 }
 0x2a0   :  { %120 = vst.msk [vmem:[%s258_s5] sm:$0xff] %vm119_vm3, %v111_v41 }
 0x2a1   :  { %126 = vst.msk [vmem:[%s258_s5] sm:$0xff] %vm125_vm4, %v123_v43 }

</bundles_post_ra>
